<compile_context>
chip_gen: v6e
topology: v6e:2x2x1
jax: 0.10.0
libtpu: 0.0.40
codegen_flags: <defaults>
</compile_context>

<pallas_src>
import functools

import numpy as np
import jax
import jax.numpy as jnp
from jax import lax
from jax.experimental import pallas as pl
from jax.experimental.pallas import tpu as pltpu

EPS = 1e-5      # nn.InstanceNorm2d default eps
LANES = 128     # lane-padded width of the resident working slab


# ----------------------------- Pallas kernel --------------------------------
def _cefn_kernel(x_ref, lin_ref, dwk_ref, dwb_ref, o_ref, *, hw):
    """Whole CEFN forward on a (N*C, 128) f32 slab resident in VMEM."""
    x = x_ref[...]                       # data in lanes [0, hw), zeros beyond
    res = x

    # Pre-broadcast, pre-masked per-lane constant rows (see make_cefn_constants)
    a1, c1e, c1o, b1 = lin_ref[0], lin_ref[1], lin_ref[2], lin_ref[3]
    a2, c2e, c2o, b2 = lin_ref[4], lin_ref[5], lin_ref[6], lin_ref[7]
    halfe, halfo = lin_ref[8], lin_ref[9]
    w3, b3, w4, b4 = lin_ref[10], lin_ref[11], lin_ref[12], lin_ref[13]

    def shifted(t, off):
        # value at lane (l + off); circular wrap is harmless because every
        # wrapped-in position is multiplied by a host-baked zero weight.
        if off == 0:
            return t
        return pltpu.roll(t, shift=(-off) % LANES, axis=1)

    inv_hw = 1.0 / hw

    def inorm(t):
        # Single-pass InstanceNorm2d (affine=False); one (n, c) instance per
        # sublane row; statistics over the hw valid lanes (pad lanes are 0).
        s = jnp.sum(t, axis=1, keepdims=True)
        sq = jnp.sum(t * t, axis=1, keepdims=True)
        m = s * inv_hw
        v = sq * inv_hw - m * m
        return (t - m) * lax.rsqrt(v + EPS)

    # norm1 -> linear (acts on the W=2 axis): y = a*x + c*partner(x) + b
    h = inorm(x)
    h = a1 * h + c1e * shifted(h, 1) + c1o * shifted(h, -1) + b1

    # depthwise 3x3, stride 1, pad 1, groups=C: nine rolled taps; H-edge and
    # W-parity validity are baked into dwk, the per-channel bias into dwb.
    acc = dwb_ref[...]
    for t in range(9):
        di, dj = t // 3 - 1, t % 3 - 1
        acc = acc + dwk_ref[t] * shifted(h, 2 * di + dj)
    h = jnp.maximum(acc, 0.0)            # ReLU

    # linear2 -> norm2
    h = a2 * h + c2e * shifted(h, 1) + c2o * shifted(h, -1) + b2
    h = inorm(h)

    # AvgPool2d((1,2),(1,2)): pooled value, replicated across each W pair
    p = 0.5 * h + halfe * shifted(h, 1) + halfo * shifted(h, -1)

    # linear3 -> relu -> linear4 -> sigmoid (1x1 linears == scalar FMAs)
    g = jnp.maximum(p * w3 + b3, 0.0)
    g = jax.nn.sigmoid(g * w4 + b4)

    # out = x * x2 + res
    o_ref[...] = h * g + res


# ------------------------- host-side constant prep ---------------------------
def make_cefn_constants(params, N, C, H, W):
    """Run ONCE per parameter set: per-lane constant rows, pre-broadcast to
    (rows, N*C, LANES) and pre-masked (valid lanes / W parity / H edges)."""
    assert W == 2, "module semantics force W == prod(shape) == 2"
    w1, b1, dw_w, dw_b, w2, b2, w3, b3, w4, b4 = [
        np.asarray(p, np.float32) for p in params]
    HW, NC = H * W, N * C
    assert HW <= LANES

    lane = np.arange(LANES)
    w_idx = lane % 2                                   # lane = 2*h + w
    h_idx = lane // 2
    valid = (lane < HW).astype(np.float32)
    even = (w_idx == 0).astype(np.float32) * valid
    odd = (w_idx == 1).astype(np.float32) * valid

    def lin_rows(wm, bv):                              # nn.Linear(2, 2) per lane
        own = wm[w_idx, w_idx] * valid                 # weight of own W position
        prt = wm[w_idx, 1 - w_idx]                     # weight of the partner
        return own, prt * even, prt * odd, bv[w_idx] * valid

    def scalar_row(v):                                 # 1x1 linear -> scalar row
        return np.full(LANES, float(v.reshape(-1)[0]), np.float32) * valid

    a1, c1e, c1o, b1r = lin_rows(w1, b1)
    a2, c2e, c2o, b2r = lin_rows(w2, b2)
    rows = [a1, c1e, c1o, b1r, a2, c2e, c2o, b2r, 0.5 * even, 0.5 * odd,
            scalar_row(w3), scalar_row(b3), scalar_row(w4), scalar_row(b4)]
    lin = np.ascontiguousarray(
        np.broadcast_to(np.stack(rows)[:, None, :], (len(rows), NC, LANES)),
        dtype=np.float32)

    # depthwise taps with validity baked in:
    #   dwk[t, n*C + c, l] = dw_w[c, di+1, dj+1] if (h+di, w+dj) in bounds else 0
    dwk = np.zeros((9, NC, LANES), np.float32)
    for t in range(9):
        di, dj = t // 3 - 1, t % 3 - 1
        ok = (valid
              * (h_idx + di >= 0) * (h_idx + di < H)
              * (w_idx + dj >= 0) * (w_idx + dj < W)).astype(np.float32)
        per_row = np.tile(dw_w[:, di + 1, dj + 1], N)          # (N*C,)
        dwk[t] = per_row[:, None] * ok[None, :]
    dwb = (np.tile(dw_b, N)[:, None] * valid[None, :]).astype(np.float32)

    return jnp.asarray(lin), jnp.asarray(dwk), jnp.asarray(dwb)


# ----------------------------- jitted forward --------------------------------
@jax.jit
def cefn_forward(x, lin, dwk, dwb):
    N, C, H, W = x.shape
    NC, HW = N * C, H * W
    x2d = jnp.pad(x.astype(jnp.float32).reshape(NC, HW),
                  ((0, 0), (0, LANES - HW)))           # lane-dense, zero pad
    vmem = pl.BlockSpec(memory_space=pltpu.MemorySpace.VMEM)
    out = pl.pallas_call(
        functools.partial(_cefn_kernel, hw=HW),
        out_shape=jax.ShapeDtypeStruct((NC, LANES), jnp.float32),
        in_specs=[vmem, vmem, vmem, vmem],
        out_specs=vmem,
    )(x2d, lin, dwk, dwb)
    return out[:, :HW].reshape(N, C, H, W)


def cefn_pallas(x, constants, pool_kernel, pool_stride):
    N, C, H, W = x.shape
    assert W == 2, "module semantics force W == prod(shape) == 2"
    assert tuple(pool_kernel) == (1, 2) and tuple(pool_stride) == (1, 2), \
        "kernel specialized to the only shape-consistent pooling config"
    lin, dwk, dwb = constants
    return cefn_forward(x, lin, dwk, dwb)


# -------------------------- plain-JAX reference ------------------------------
def cefn_reference(x, params, pool_kernel, pool_stride):
    w1, b1, dw_w, dw_b, w2, b2, w3, b3, w4, b4 = params
    C = dw_w.shape[0]

    def inorm(t):
        m = t.mean(axis=(2, 3), keepdims=True)
        v = ((t - m) ** 2).mean(axis=(2, 3), keepdims=True)
        return (t - m) / jnp.sqrt(v + EPS)

    res = x
    h = inorm(x)
    h = h @ w1.T + b1
    h = lax.conv_general_dilated(
        h, dw_w.reshape(C, 1, 3, 3), window_strides=(1, 1),
        padding=((1, 1), (1, 1)), feature_group_count=C,
        dimension_numbers=("NCHW", "OIHW", "NCHW")) + dw_b.reshape(1, C, 1, 1)
    h = jnp.maximum(h, 0.0)
    h = h @ w2.T + b2
    h = inorm(h)
    kh, kw = pool_kernel
    sh, sw = pool_stride
    g = lax.reduce_window(h, 0.0, lax.add, (1, 1, kh, kw),
                          (1, 1, sh, sw), "VALID") / float(kh * kw)
    g = g @ w3.T + b3
    g = jnp.maximum(g, 0.0)
    g = g @ w4.T + b4
    g = jax.nn.sigmoid(g)
    return h * g + res


# --------------------------------- main --------------------------------------
if __name__ == "__main__":
    feat = 4
    shape_tuple = (1, 1, 2)          # prod = 2 -> Linear dim, small_shape = 1
    pool_kernel = (1, 2)
    pool_stride = (1, 2)
    N, H = 2, 16
    W = shape_tuple[0] * shape_tuple[1] * shape_tuple[2]
    small = W // 2

    key = jax.random.PRNGKey(0)
    ks = jax.random.split(key, 12)

    def lin_init(kw_, kb_, fan_in, shape_w, shape_b):
        bound = 1.0 / np.sqrt(fan_in)
        w = jax.random.uniform(kw_, shape_w, jnp.float32, -bound, bound)
        b = jax.random.uniform(kb_, shape_b, jnp.float32, -bound, bound)
        return w, b

    x = jax.random.normal(ks[0], (N, feat, H, W), jnp.float32)
    w1, b1 = lin_init(ks[1], ks[2], W, (W, W), (W,))
    dw_w = jax.random.uniform(ks[3], (feat, 3, 3), jnp.float32, -1 / 3, 1 / 3)
    dw_b = jax.random.uniform(ks[4], (feat,), jnp.float32, -1 / 3, 1 / 3)
    w2, b2 = lin_init(ks[5], ks[6], W, (W, W), (W,))
    w3, b3 = lin_init(ks[7], ks[8], small, (small, small), (small,))
    w4, b4 = lin_init(ks[9], ks[10], small, (small, small), (small,))
    params = (w1, b1, dw_w, dw_b, w2, b2, w3, b3, w4, b4)

    # Host prep hoisted out of the hot path: done once, reused every call.
    constants = make_cefn_constants(params, N, feat, H, W)

    out = cefn_pallas(x, constants, pool_kernel, pool_stride)
    out = jax.block_until_ready(out)

    ref = cefn_reference(x, params, pool_kernel, pool_stride)
    ref = jax.block_until_ready(ref)

    assert out.shape == x.shape and out.dtype == jnp.float32
    max_err = float(jnp.max(jnp.abs(out - ref)))
    assert max_err < 5e-5, f"mismatch vs reference: {max_err}"
    print("KERNEL_OK")
</pallas_src>

<mosaic_0001>
module attributes {stable_mosaic.version = 11 : i64} {
  func.func @_cefn_kernel(%arg0: memref<8x128xf32, #tpu.memory_space<vmem>>, %arg1: memref<14x8x128xf32, #tpu.memory_space<vmem>>, %arg2: memref<9x8x128xf32, #tpu.memory_space<vmem>>, %arg3: memref<8x128xf32, #tpu.memory_space<vmem>>, %arg4: memref<8x128xf32, #tpu.memory_space<vmem>>) attributes {dimension_semantics = [], scalar_prefetch = 0 : i64, scratch_operands = 0 : i64, tpu.core_type = #tpu.core_type<tc>} {
    %c0 = arith.constant 0 : index
    %c0_0 = arith.constant 0 : index
    %0 = vector.load %arg0[%c0, %c0_0] : memref<8x128xf32, #tpu.memory_space<vmem>>, vector<8x128xf32>
    %c0_1 = arith.constant 0 : index
    %c0_2 = arith.constant 0 : index
    %c0_3 = arith.constant 0 : index
    %1 = vector.load %arg1[%c0_1, %c0_2, %c0_3] : memref<14x8x128xf32, #tpu.memory_space<vmem>>, vector<1x8x128xf32>
    %2 = vector.shape_cast %1 : vector<1x8x128xf32> to vector<8x128xf32>
    %c1 = arith.constant 1 : index
    %c0_4 = arith.constant 0 : index
    %c0_5 = arith.constant 0 : index
    %3 = vector.load %arg1[%c1, %c0_4, %c0_5] : memref<14x8x128xf32, #tpu.memory_space<vmem>>, vector<1x8x128xf32>
    %4 = vector.shape_cast %3 : vector<1x8x128xf32> to vector<8x128xf32>
    %c2 = arith.constant 2 : index
    %c0_6 = arith.constant 0 : index
    %c0_7 = arith.constant 0 : index
    %5 = vector.load %arg1[%c2, %c0_6, %c0_7] : memref<14x8x128xf32, #tpu.memory_space<vmem>>, vector<1x8x128xf32>
    %6 = vector.shape_cast %5 : vector<1x8x128xf32> to vector<8x128xf32>
    %c3 = arith.constant 3 : index
    %c0_8 = arith.constant 0 : index
    %c0_9 = arith.constant 0 : index
    %7 = vector.load %arg1[%c3, %c0_8, %c0_9] : memref<14x8x128xf32, #tpu.memory_space<vmem>>, vector<1x8x128xf32>
    %8 = vector.shape_cast %7 : vector<1x8x128xf32> to vector<8x128xf32>
    %c4 = arith.constant 4 : index
    %c0_10 = arith.constant 0 : index
    %c0_11 = arith.constant 0 : index
    %9 = vector.load %arg1[%c4, %c0_10, %c0_11] : memref<14x8x128xf32, #tpu.memory_space<vmem>>, vector<1x8x128xf32>
    %10 = vector.shape_cast %9 : vector<1x8x128xf32> to vector<8x128xf32>
    %c5 = arith.constant 5 : index
    %c0_12 = arith.constant 0 : index
    %c0_13 = arith.constant 0 : index
    %11 = vector.load %arg1[%c5, %c0_12, %c0_13] : memref<14x8x128xf32, #tpu.memory_space<vmem>>, vector<1x8x128xf32>
    %12 = vector.shape_cast %11 : vector<1x8x128xf32> to vector<8x128xf32>
    %c6 = arith.constant 6 : index
    %c0_14 = arith.constant 0 : index
    %c0_15 = arith.constant 0 : index
    %13 = vector.load %arg1[%c6, %c0_14, %c0_15] : memref<14x8x128xf32, #tpu.memory_space<vmem>>, vector<1x8x128xf32>
    %14 = vector.shape_cast %13 : vector<1x8x128xf32> to vector<8x128xf32>
    %c7 = arith.constant 7 : index
    %c0_16 = arith.constant 0 : index
    %c0_17 = arith.constant 0 : index
    %15 = vector.load %arg1[%c7, %c0_16, %c0_17] : memref<14x8x128xf32, #tpu.memory_space<vmem>>, vector<1x8x128xf32>
    %16 = vector.shape_cast %15 : vector<1x8x128xf32> to vector<8x128xf32>
    %c8 = arith.constant 8 : index
    %c0_18 = arith.constant 0 : index
    %c0_19 = arith.constant 0 : index
    %17 = vector.load %arg1[%c8, %c0_18, %c0_19] : memref<14x8x128xf32, #tpu.memory_space<vmem>>, vector<1x8x128xf32>
    %18 = vector.shape_cast %17 : vector<1x8x128xf32> to vector<8x128xf32>
    %c9 = arith.constant 9 : index
    %c0_20 = arith.constant 0 : index
    %c0_21 = arith.constant 0 : index
    %19 = vector.load %arg1[%c9, %c0_20, %c0_21] : memref<14x8x128xf32, #tpu.memory_space<vmem>>, vector<1x8x128xf32>
    %20 = vector.shape_cast %19 : vector<1x8x128xf32> to vector<8x128xf32>
    %c10 = arith.constant 10 : index
    %c0_22 = arith.constant 0 : index
    %c0_23 = arith.constant 0 : index
    %21 = vector.load %arg1[%c10, %c0_22, %c0_23] : memref<14x8x128xf32, #tpu.memory_space<vmem>>, vector<1x8x128xf32>
    %22 = vector.shape_cast %21 : vector<1x8x128xf32> to vector<8x128xf32>
    %c11 = arith.constant 11 : index
    %c0_24 = arith.constant 0 : index
    %c0_25 = arith.constant 0 : index
    %23 = vector.load %arg1[%c11, %c0_24, %c0_25] : memref<14x8x128xf32, #tpu.memory_space<vmem>>, vector<1x8x128xf32>
    %24 = vector.shape_cast %23 : vector<1x8x128xf32> to vector<8x128xf32>
    %c12 = arith.constant 12 : index
    %c0_26 = arith.constant 0 : index
    %c0_27 = arith.constant 0 : index
    %25 = vector.load %arg1[%c12, %c0_26, %c0_27] : memref<14x8x128xf32, #tpu.memory_space<vmem>>, vector<1x8x128xf32>
    %26 = vector.shape_cast %25 : vector<1x8x128xf32> to vector<8x128xf32>
    %c13 = arith.constant 13 : index
    %c0_28 = arith.constant 0 : index
    %c0_29 = arith.constant 0 : index
    %27 = vector.load %arg1[%c13, %c0_28, %c0_29] : memref<14x8x128xf32, #tpu.memory_space<vmem>>, vector<1x8x128xf32>
    %28 = vector.shape_cast %27 : vector<1x8x128xf32> to vector<8x128xf32>
    %cst = arith.constant dense<0.000000e+00> : vector<8xf32>
    %29 = vector.multi_reduction <add>, %0, %cst [1] : vector<8x128xf32> to vector<8xf32>
    %30 = vector.shape_cast %29 : vector<8xf32> to vector<8x1xf32>
    %31 = arith.mulf %0, %0 : vector<8x128xf32>
    %cst_30 = arith.constant dense<0.000000e+00> : vector<8xf32>
    %32 = vector.multi_reduction <add>, %31, %cst_30 [1] : vector<8x128xf32> to vector<8xf32>
    %33 = vector.shape_cast %32 : vector<8xf32> to vector<8x1xf32>
    %cst_31 = arith.constant 3.125000e-02 : f32
    %34 = vector.broadcast %cst_31 : f32 to vector<8x1xf32>
    %35 = arith.mulf %30, %34 : vector<8x1xf32>
    %cst_32 = arith.constant 3.125000e-02 : f32
    %36 = vector.broadcast %cst_32 : f32 to vector<8x1xf32>
    %37 = arith.mulf %33, %36 : vector<8x1xf32>
    %38 = arith.mulf %35, %35 : vector<8x1xf32>
    %39 = arith.subf %37, %38 : vector<8x1xf32>
    %40 = vector.broadcast %35 : vector<8x1xf32> to vector<8x128xf32>
    %41 = arith.subf %0, %40 : vector<8x128xf32>
    %cst_33 = arith.constant 9.99999974E-6 : f32
    %42 = vector.broadcast %cst_33 : f32 to vector<8x1xf32>
    %43 = arith.addf %39, %42 : vector<8x1xf32>
    %44 = math.rsqrt %43 : vector<8x1xf32>
    %45 = vector.broadcast %44 : vector<8x1xf32> to vector<8x128xf32>
    %46 = arith.mulf %41, %45 : vector<8x128xf32>
    %47 = arith.mulf %2, %46 : vector<8x128xf32>
    %c127_i32 = arith.constant 127 : i32
    %48 = tpu.dynamic_rotate %46 by %c127_i32 dim 1 : vector<8x128xf32>, i32 -> vector<8x128xf32>
    %49 = arith.mulf %4, %48 : vector<8x128xf32>
    %50 = arith.addf %47, %49 : vector<8x128xf32>
    %c1_i32 = arith.constant 1 : i32
    %51 = tpu.dynamic_rotate %46 by %c1_i32 dim 1 : vector<8x128xf32>, i32 -> vector<8x128xf32>
    %52 = arith.mulf %6, %51 : vector<8x128xf32>
    %53 = arith.addf %50, %52 : vector<8x128xf32>
    %54 = arith.addf %53, %8 : vector<8x128xf32>
    %c0_34 = arith.constant 0 : index
    %c0_35 = arith.constant 0 : index
    %55 = vector.load %arg3[%c0_34, %c0_35] : memref<8x128xf32, #tpu.memory_space<vmem>>, vector<8x128xf32>
    %c0_36 = arith.constant 0 : index
    %c0_37 = arith.constant 0 : index
    %c0_38 = arith.constant 0 : index
    %56 = vector.load %arg2[%c0_36, %c0_37, %c0_38] : memref<9x8x128xf32, #tpu.memory_space<vmem>>, vector<1x8x128xf32>
    %57 = vector.shape_cast %56 : vector<1x8x128xf32> to vector<8x128xf32>
    %c3_i32 = arith.constant 3 : i32
    %58 = tpu.dynamic_rotate %54 by %c3_i32 dim 1 : vector<8x128xf32>, i32 -> vector<8x128xf32>
    %59 = arith.mulf %57, %58 : vector<8x128xf32>
    %60 = arith.addf %55, %59 : vector<8x128xf32>
    %c1_39 = arith.constant 1 : index
    %c0_40 = arith.constant 0 : index
    %c0_41 = arith.constant 0 : index
    %61 = vector.load %arg2[%c1_39, %c0_40, %c0_41] : memref<9x8x128xf32, #tpu.memory_space<vmem>>, vector<1x8x128xf32>
    %62 = vector.shape_cast %61 : vector<1x8x128xf32> to vector<8x128xf32>
    %c2_i32 = arith.constant 2 : i32
    %63 = tpu.dynamic_rotate %54 by %c2_i32 dim 1 : vector<8x128xf32>, i32 -> vector<8x128xf32>
    %64 = arith.mulf %62, %63 : vector<8x128xf32>
    %65 = arith.addf %60, %64 : vector<8x128xf32>
    %c2_42 = arith.constant 2 : index
    %c0_43 = arith.constant 0 : index
    %c0_44 = arith.constant 0 : index
    %66 = vector.load %arg2[%c2_42, %c0_43, %c0_44] : memref<9x8x128xf32, #tpu.memory_space<vmem>>, vector<1x8x128xf32>
    %67 = vector.shape_cast %66 : vector<1x8x128xf32> to vector<8x128xf32>
    %c1_i32_45 = arith.constant 1 : i32
    %68 = tpu.dynamic_rotate %54 by %c1_i32_45 dim 1 : vector<8x128xf32>, i32 -> vector<8x128xf32>
    %69 = arith.mulf %67, %68 : vector<8x128xf32>
    %70 = arith.addf %65, %69 : vector<8x128xf32>
    %c3_46 = arith.constant 3 : index
    %c0_47 = arith.constant 0 : index
    %c0_48 = arith.constant 0 : index
    %71 = vector.load %arg2[%c3_46, %c0_47, %c0_48] : memref<9x8x128xf32, #tpu.memory_space<vmem>>, vector<1x8x128xf32>
    %72 = vector.shape_cast %71 : vector<1x8x128xf32> to vector<8x128xf32>
    %c1_i32_49 = arith.constant 1 : i32
    %73 = tpu.dynamic_rotate %54 by %c1_i32_49 dim 1 : vector<8x128xf32>, i32 -> vector<8x128xf32>
    %74 = arith.mulf %72, %73 : vector<8x128xf32>
    %75 = arith.addf %70, %74 : vector<8x128xf32>
    %c4_50 = arith.constant 4 : index
    %c0_51 = arith.constant 0 : index
    %c0_52 = arith.constant 0 : index
    %76 = vector.load %arg2[%c4_50, %c0_51, %c0_52] : memref<9x8x128xf32, #tpu.memory_space<vmem>>, vector<1x8x128xf32>
    %77 = vector.shape_cast %76 : vector<1x8x128xf32> to vector<8x128xf32>
    %78 = arith.mulf %77, %54 : vector<8x128xf32>
    %79 = arith.addf %75, %78 : vector<8x128xf32>
    %c5_53 = arith.constant 5 : index
    %c0_54 = arith.constant 0 : index
    %c0_55 = arith.constant 0 : index
    %80 = vector.load %arg2[%c5_53, %c0_54, %c0_55] : memref<9x8x128xf32, #tpu.memory_space<vmem>>, vector<1x8x128xf32>
    %81 = vector.shape_cast %80 : vector<1x8x128xf32> to vector<8x128xf32>
    %c127_i32_56 = arith.constant 127 : i32
    %82 = tpu.dynamic_rotate %54 by %c127_i32_56 dim 1 : vector<8x128xf32>, i32 -> vector<8x128xf32>
    %83 = arith.mulf %81, %82 : vector<8x128xf32>
    %84 = arith.addf %79, %83 : vector<8x128xf32>
    %c6_57 = arith.constant 6 : index
    %c0_58 = arith.constant 0 : index
    %c0_59 = arith.constant 0 : index
    %85 = vector.load %arg2[%c6_57, %c0_58, %c0_59] : memref<9x8x128xf32, #tpu.memory_space<vmem>>, vector<1x8x128xf32>
    %86 = vector.shape_cast %85 : vector<1x8x128xf32> to vector<8x128xf32>
    %c127_i32_60 = arith.constant 127 : i32
    %87 = tpu.dynamic_rotate %54 by %c127_i32_60 dim 1 : vector<8x128xf32>, i32 -> vector<8x128xf32>
    %88 = arith.mulf %86, %87 : vector<8x128xf32>
    %89 = arith.addf %84, %88 : vector<8x128xf32>
    %c7_61 = arith.constant 7 : index
    %c0_62 = arith.constant 0 : index
    %c0_63 = arith.constant 0 : index
    %90 = vector.load %arg2[%c7_61, %c0_62, %c0_63] : memref<9x8x128xf32, #tpu.memory_space<vmem>>, vector<1x8x128xf32>
    %91 = vector.shape_cast %90 : vector<1x8x128xf32> to vector<8x128xf32>
    %c126_i32 = arith.constant 126 : i32
    %92 = tpu.dynamic_rotate %54 by %c126_i32 dim 1 : vector<8x128xf32>, i32 -> vector<8x128xf32>
    %93 = arith.mulf %91, %92 : vector<8x128xf32>
    %94 = arith.addf %89, %93 : vector<8x128xf32>
    %c8_64 = arith.constant 8 : index
    %c0_65 = arith.constant 0 : index
    %c0_66 = arith.constant 0 : index
    %95 = vector.load %arg2[%c8_64, %c0_65, %c0_66] : memref<9x8x128xf32, #tpu.memory_space<vmem>>, vector<1x8x128xf32>
    %96 = vector.shape_cast %95 : vector<1x8x128xf32> to vector<8x128xf32>
    %c125_i32 = arith.constant 125 : i32
    %97 = tpu.dynamic_rotate %54 by %c125_i32 dim 1 : vector<8x128xf32>, i32 -> vector<8x128xf32>
    %98 = arith.mulf %96, %97 : vector<8x128xf32>
    %99 = arith.addf %94, %98 : vector<8x128xf32>
    %cst_67 = arith.constant 0.000000e+00 : f32
    %100 = vector.broadcast %cst_67 : f32 to vector<8x128xf32>
    %101 = arith.maximumf %99, %100 : vector<8x128xf32>
    %102 = arith.mulf %10, %101 : vector<8x128xf32>
    %c127_i32_68 = arith.constant 127 : i32
    %103 = tpu.dynamic_rotate %101 by %c127_i32_68 dim 1 : vector<8x128xf32>, i32 -> vector<8x128xf32>
    %104 = arith.mulf %12, %103 : vector<8x128xf32>
    %105 = arith.addf %102, %104 : vector<8x128xf32>
    %c1_i32_69 = arith.constant 1 : i32
    %106 = tpu.dynamic_rotate %101 by %c1_i32_69 dim 1 : vector<8x128xf32>, i32 -> vector<8x128xf32>
    %107 = arith.mulf %14, %106 : vector<8x128xf32>
    %108 = arith.addf %105, %107 : vector<8x128xf32>
    %109 = arith.addf %108, %16 : vector<8x128xf32>
    %cst_70 = arith.constant dense<0.000000e+00> : vector<8xf32>
    %110 = vector.multi_reduction <add>, %109, %cst_70 [1] : vector<8x128xf32> to vector<8xf32>
    %111 = vector.shape_cast %110 : vector<8xf32> to vector<8x1xf32>
    %112 = arith.mulf %109, %109 : vector<8x128xf32>
    %cst_71 = arith.constant dense<0.000000e+00> : vector<8xf32>
    %113 = vector.multi_reduction <add>, %112, %cst_71 [1] : vector<8x128xf32> to vector<8xf32>
    %114 = vector.shape_cast %113 : vector<8xf32> to vector<8x1xf32>
    %cst_72 = arith.constant 3.125000e-02 : f32
    %115 = vector.broadcast %cst_72 : f32 to vector<8x1xf32>
    %116 = arith.mulf %111, %115 : vector<8x1xf32>
    %cst_73 = arith.constant 3.125000e-02 : f32
    %117 = vector.broadcast %cst_73 : f32 to vector<8x1xf32>
    %118 = arith.mulf %114, %117 : vector<8x1xf32>
    %119 = arith.mulf %116, %116 : vector<8x1xf32>
    %120 = arith.subf %118, %119 : vector<8x1xf32>
    %121 = vector.broadcast %116 : vector<8x1xf32> to vector<8x128xf32>
    %122 = arith.subf %109, %121 : vector<8x128xf32>
    %cst_74 = arith.constant 9.99999974E-6 : f32
    %123 = vector.broadcast %cst_74 : f32 to vector<8x1xf32>
    %124 = arith.addf %120, %123 : vector<8x1xf32>
    %125 = math.rsqrt %124 : vector<8x1xf32>
    %126 = vector.broadcast %125 : vector<8x1xf32> to vector<8x128xf32>
    %127 = arith.mulf %122, %126 : vector<8x128xf32>
    %cst_75 = arith.constant 5.000000e-01 : f32
    %128 = vector.broadcast %cst_75 : f32 to vector<8x128xf32>
    %129 = arith.mulf %128, %127 : vector<8x128xf32>
    %c127_i32_76 = arith.constant 127 : i32
    %130 = tpu.dynamic_rotate %127 by %c127_i32_76 dim 1 : vector<8x128xf32>, i32 -> vector<8x128xf32>
    %131 = arith.mulf %18, %130 : vector<8x128xf32>
    %132 = arith.addf %129, %131 : vector<8x128xf32>
    %c1_i32_77 = arith.constant 1 : i32
    %133 = tpu.dynamic_rotate %127 by %c1_i32_77 dim 1 : vector<8x128xf32>, i32 -> vector<8x128xf32>
    %134 = arith.mulf %20, %133 : vector<8x128xf32>
    %135 = arith.addf %132, %134 : vector<8x128xf32>
    %136 = arith.mulf %135, %22 : vector<8x128xf32>
    %137 = arith.addf %136, %24 : vector<8x128xf32>
    %cst_78 = arith.constant 0.000000e+00 : f32
    %138 = vector.broadcast %cst_78 : f32 to vector<8x128xf32>
    %139 = arith.maximumf %137, %138 : vector<8x128xf32>
    %140 = arith.mulf %139, %26 : vector<8x128xf32>
    %141 = arith.addf %140, %28 : vector<8x128xf32>
    %142 = arith.negf %141 : vector<8x128xf32>
    %143 = math.exp %142 : vector<8x128xf32>
    %cst_79 = arith.constant 1.000000e+00 : f32
    %144 = vector.broadcast %cst_79 : f32 to vector<8x128xf32>
    %145 = arith.addf %144, %143 : vector<8x128xf32>
    %146 = arith.divf %144, %145 : vector<8x128xf32>
    %147 = arith.mulf %127, %146 : vector<8x128xf32>
    %148 = arith.addf %147, %0 : vector<8x128xf32>
    %c0_80 = arith.constant 0 : index
    %c0_81 = arith.constant 0 : index
    %149 = vector.load %arg4[%c0_80, %c0_81] : memref<8x128xf32, #tpu.memory_space<vmem>>, vector<8x128xf32>
    tpu.vector_store %arg4[%c0_80, %c0_81], %148 {strides = array<i32>} : memref<8x128xf32, #tpu.memory_space<vmem>>, vector<8x128xf32>,
    return
  }
}

</mosaic_0001>

<bundles_post_ra>
// kernel: cefn_forward.1
= control target key start
LH: loop header
LB: loop body
LE: loop exit
PB: predicated region body
PF: predicated region fallthrough
CT: control target
= control target key end

     0   :  { %s204_s17 = smov 1   ;;  %s205_s26 = smov 2   ;;  %s327_s0 = inlined_call_operand.vmem [shape: f32[8,128], index: 0, kind: input, shape index: {}]   ;;  %s328_s1 = inlined_call_operand.vmem [shape: f32[14,8,128], index: 1, kind: input, shape index: {}]   ;;  %s329_s2 = inlined_call_operand.vmem [shape: f32[9,8,128], index: 2, kind: input, shape index: {}]   ;;  %s330_s3 = inlined_call_operand.vmem [shape: f32[8,128], index: 3, kind: input, shape index: {}]   ;;  %s331_s4 = inlined_call_operand.vmem [shape: f32[8,128], index: 4, kind: output, shape index: {}]  }
   0x1   :  { %v237_v0 = vld [vmem:[%s327_s0] sm:$0xff]  ;;  %s203_s0 = smov 127   ;;  %v167_v12 = vld [vmem:[%s328_s1 + $0x8] sm:$0xff]  ;;  %v168_v16 = vld [vmem:[%s328_s1 + $0x10] sm:$0xff]  ;;  %s206_s27 = smov 3  }
   0x2   :  { %45 = vadd.xlane.f32.xlu0 %v237_v0  ;;  %v47_v1 = vmul.f32 %v237_v0, %v237_v0  ;;  %v18_v13 = vld [vmem:[%s328_s1] sm:$0xff]  ;;  %v169_v21 = vld [vmem:[%s328_s1 + $0x18] sm:$0xff]  ;;  %s207_s28 = smov 126   ;;  %s208_s29 = smov 125   ;;  %v180_v25 = vld [vmem:[%s329_s2 + $0x8] sm:$0xff] }
   0x3   :  { %v69_v24 = vld [vmem:[%s329_s2] sm:$0xff]  ;;  %v181_v30 = vld [vmem:[%s329_s2 + $0x10] sm:$0xff]  ;;  %v182_v33 = vld [vmem:[%s329_s2 + $0x18] sm:$0xff] }
   0x4   :  { %v68_v27 = vld [vmem:[%s330_s3] sm:$0xff]  ;;  %v184_v40 = vld [vmem:[%s329_s2 + $0x28] sm:$0xff]  ;;  %v185_v44 = vld [vmem:[%s329_s2 + $0x30] sm:$0xff] }
   0x5   :  { %v183_v37 = vld [vmem:[%s329_s2 + $0x20] sm:$0xff]  ;;  %v186_v47 = vld [vmem:[%s329_s2 + $0x38] sm:$0xff]  ;;  %v171_v60 = vld [vmem:[%s328_s1 + $0x28] sm:$0xff] }
   0x6   :  { %48 = vadd.xlane.f32.xlu0 %v47_v1  ;;  %v187_v51 = vld [vmem:[%s329_s2 + $0x40] sm:$0xff]  ;;  %v172_v61 = vld [vmem:[%s328_s1 + $0x30] sm:$0xff] }
   0x7   :  { %v170_v59 = vld [vmem:[%s328_s1 + $0x20] sm:$0xff] }
  0x8b   :  { %v46_v2 = vpop.xlane.xlu0 %45 }
  0x8c   :  { %v50_v3 = vmul.f32 0.03125, %v46_v2 }
  0x8e   :  { %v52_v5 = vmul.f32 %v50_v3, %v50_v3  ;;  %v54_v9 = vsub.f32 %v237_v0, %v50_v3 }
  0x8f   :  { %v49_v4 = vpop.xlane.xlu0 %48 }
  0x90   :  { %v51_v6 = vmul.f32 0.03125, %v49_v4 }
  0x92   :  { %v53_v7 = vsub.f32 %v51_v6, %v52_v5  ;;  %v173_v5 = vld [vmem:[%s328_s1 + $0x38] sm:$0xff] }
  0x94   :  { %v55_v8 = vadd.f32 1e-05, %v53_v7 }
  0x96   :  { %195 = vrsqrt.f32 %v55_v8 }
  0xa3   :  { %v196_v10 = vpop.eup %195 }
  0xa4   :  { %v57_v11 = vmul.f32 %v196_v10, %v54_v9 }
  0xa6   :  { %59 = vrot.lane.b32.xlu1 %v57_v11, %s203_s0  ;;  %v58_v17 = vmul.f32 %v57_v11, %v18_v13 }
  0xaa   :  { %63 = vrot.lane.b32.xlu1 %v57_v11, %s204_s17 }
 0x118   :  { %v60_v14 = vpop.permute.xlu1 %59 }
 0x119   :  { %v61_v15 = vmul.f32 %v167_v12, %v60_v14 }
 0x11b   :  { %v62_v19 = vadd.f32 %v61_v15, %v58_v17 }
 0x11c   :  { %v64_v18 = vpop.permute.xlu1 %63 }
 0x11d   :  { %v65_v20 = vmul.f32 %v168_v16, %v64_v18 }
 0x11f   :  { %v66_v22 = vadd.f32 %v65_v20, %v62_v19  ;;  %v174_v19 = vld [vmem:[%s328_s1 + $0x40] sm:$0xff]  ;;  %v175_v20 = vld [vmem:[%s328_s1 + $0x48] sm:$0xff] }
 0x121   :  { %v67_v23 = vadd.f32 %v169_v21, %v66_v22 }
 0x123   :  { %76 = vrot.lane.b32.xlu1 %v67_v23, %s205_s26  ;;  %70 = vrot.lane.b32.xlu0 %v67_v23, %s206_s27  ;;  %v92_v43 = vmul.f32 %v183_v37, %v67_v23 }
 0x127   :  { %82 = vrot.lane.b32.xlu1 %v67_v23, %s204_s17 }
 0x12b   :  { %96 = vrot.lane.b32.xlu1 %v67_v23, %s203_s0 }
 0x12f   :  { %106 = vrot.lane.b32.xlu1 %v67_v23, %s207_s28 }
 0x133   :  { %112 = vrot.lane.b32.xlu1 %v67_v23, %s208_s29 }
 0x195   :  { %v77_v26 = vpop.permute.xlu1 %76  ;;  %v71_v28 = vpop.permute.xlu0 %70 }
 0x196   :  { %v72_v29 = vmul.f32 %v71_v28, %v69_v24  ;;  %v78_v31 = vmul.f32 %v180_v25, %v77_v26 }
 0x198   :  { %v73_v32 = vadd.f32 %v72_v29, %v68_v27  ;;  %v176_v27 = vld [vmem:[%s328_s1 + $0x50] sm:$0xff]  ;;  %v177_v29 = vld [vmem:[%s328_s1 + $0x58] sm:$0xff] }
 0x199   :  { %v83_v34 = vpop.permute.xlu1 %82 }
 0x19a   :  { %v79_v35 = vadd.f32 %v78_v31, %v73_v32  ;;  %v84_v36 = vmul.f32 %v181_v30, %v83_v34  ;;  %v88_v39 = vmul.f32 %v182_v33, %v83_v34  ;;  %v178_v32 = vld [vmem:[%s328_s1 + $0x60] sm:$0xff]  ;;  %v179_v34 = vld [vmem:[%s328_s1 + $0x68] sm:$0xff] }
 0x19c   :  { %v85_v38 = vadd.f32 %v84_v36, %v79_v35 }
 0x19d   :  { %v97_v41 = vpop.permute.xlu1 %96 }
 0x19e   :  { %v89_v42 = vadd.f32 %v88_v39, %v85_v38  ;;  %v98_v46 = vmul.f32 %v184_v40, %v97_v41  ;;  %v102_v50 = vmul.f32 %v185_v44, %v97_v41 }
 0x1a0   :  { %v93_v45 = vadd.f32 %v92_v43, %v89_v42 }
 0x1a1   :  { %v107_v48 = vpop.permute.xlu1 %106 }
 0x1a2   :  { %v99_v49 = vadd.f32 %v98_v46, %v93_v45  ;;  %v108_v53 = vmul.f32 %v186_v47, %v107_v48 }
 0x1a4   :  { %v103_v52 = vadd.f32 %v102_v50, %v99_v49 }
 0x1a5   :  { %v113_v54 = vpop.permute.xlu1 %112 }
 0x1a6   :  { %v109_v55 = vadd.f32 %v108_v53, %v103_v52  ;;  %v114_v56 = vmul.f32 %v187_v51, %v113_v54 }
 0x1a8   :  { %v115_v57 = vadd.f32 %v114_v56, %v109_v55 }
 0x1aa   :  { %v116_v58 = vmax.f32 %v115_v57, 0.0 }
 0x1ac   :  { %122 = vrot.lane.b32.xlu0 %v116_v58, %s204_s17  ;;  %118 = vrot.lane.b32.xlu1 %v116_v58, %s203_s0  ;;  %v117_v1 = vmul.f32 %v170_v59, %v116_v58 }
 0x21e   :  { %v123_v62 = vpop.permute.xlu0 %122  ;;  %v119_v63 = vpop.permute.xlu1 %118 }
 0x21f   :  { %v120_v2 = vmul.f32 %v171_v60, %v119_v63  ;;  %v124_v3 = vmul.f32 %v172_v61, %v123_v62 }
 0x221   :  { %v121_v4 = vadd.f32 %v120_v2, %v117_v1 }
 0x223   :  { %v125_v6 = vadd.f32 %v124_v3, %v121_v4 }
 0x225   :  { %v126_v7 = vadd.f32 %v173_v5, %v125_v6 }
 0x227   :  { %127 = vadd.xlane.f32.xlu1 %v126_v7  ;;  %v129_v8 = vmul.f32 %v126_v7, %v126_v7 }
 0x229   :  { %130 = vadd.xlane.f32.xlu0 %v129_v8 }
 0x2b0   :  { %v128_v9 = vpop.xlane.xlu1 %127 }
 0x2b1   :  { %v132_v10 = vmul.f32 0.03125, %v128_v9 }
 0x2b2   :  { %v131_v11 = vpop.xlane.xlu0 %130 }
 0x2b3   :  { %v134_v12 = vmul.f32 %v132_v10, %v132_v10  ;;  %v133_v13 = vmul.f32 0.03125, %v131_v11  ;;  %v136_v16 = vsub.f32 %v126_v7, %v132_v10 }
 0x2b5   :  { %v135_v14 = vsub.f32 %v133_v13, %v134_v12 }
 0x2b7   :  { %v137_v15 = vadd.f32 1e-05, %v135_v14 }
 0x2b9   :  { %197 = vrsqrt.f32 %v137_v15 }
 0x2c6   :  { %v198_v17 = vpop.eup %197 }
 0x2c7   :  { %v139_v18 = vmul.f32 %v198_v17, %v136_v16 }
 0x2c9   :  { %145 = vrot.lane.b32.xlu1 %v139_v18, %s204_s17  ;;  %141 = vrot.lane.b32.xlu0 %v139_v18, %s203_s0  ;;  %v140_v23 = vmul.f32 0.5, %v139_v18 }
 0x33b   :  { %v146_v21 = vpop.permute.xlu1 %145  ;;  %v142_v22 = vpop.permute.xlu0 %141 }
 0x33c   :  { %v143_v24 = vmul.f32 %v174_v19, %v142_v22  ;;  %v147_v25 = vmul.f32 %v175_v20, %v146_v21 }
 0x33e   :  { %v144_v26 = vadd.f32 %v143_v24, %v140_v23 }
 0x340   :  { %v148_v28 = vadd.f32 %v147_v25, %v144_v26 }
 0x342   :  { %v149_v30 = vmul.f32 %v176_v27, %v148_v28 }
 0x344   :  { %v150_v31 = vadd.f32 %v177_v29, %v149_v30 }
 0x346   :  { %v151_v33 = vmax.f32 %v150_v31, 0.0 }
 0x348   :  { %v152_v35 = vmul.f32 %v178_v32, %v151_v33 }
 0x34a   :  { %v153_v36 = vadd.f32 %v179_v34, %v152_v35 }
 0x34c   :  { %v188_v37 = vmul.f32 -1.442695, %v153_v36 }
 0x34e   :  { %199 = vpow2.f32 %v188_v37 }
 0x35b   :  { %v200_v38 = vpop.eup %199 }
 0x35c   :  { %v157_v39 = vadd.f32 1.0, %v200_v38 }
 0x35e   :  { %201 = vrcp.f32 %v157_v39 }
 0x36b   :  { %v202_v40 = vpop.eup %201 }
 0x36c   :  { %v160_v41 = vmul.f32 %v202_v40, %v139_v18 }
 0x36e   :  { %v161_v42 = vadd.f32 %v160_v41, %v237_v0 }
 0x370   :  { %162 = vst [vmem:[%s331_s4] sm:$0xff] %v161_v42 }

</bundles_post_ra>
